<compile_context>
chip_gen: v6e
topology: v6e:2x2x1
jax: 0.10.0
libtpu: 0.0.40
codegen_flags: <defaults>
</compile_context>

<pallas_src>
import functools

import jax
import jax.numpy as jnp
from jax.experimental import pallas as pl
from jax.experimental.pallas import tpu as pltpu


def _round_up(x, m):
    return ((x + m - 1) // m) * m


def _fc_bias_relu_kernel(x_ref, w_ref, b_ref, o_ref, acc_ref):
    # x_ref: (tm, tk)  w_ref: (tk, tn)  b_ref: (1, tn)  o_ref: (tm, tn)
    k = pl.program_id(2)

    @pl.when(k == 0)
    def _():
        acc_ref[...] = jnp.zeros_like(acc_ref)

    acc_ref[...] += jnp.dot(
        x_ref[...], w_ref[...], preferred_element_type=jnp.float32
    )

    @pl.when(k == pl.num_programs(2) - 1)
    def _():
        o_ref[...] = jnp.maximum(acc_ref[...] + b_ref[...], 0.0).astype(o_ref.dtype)


def prepare_fc_params(weight, bias, *, compute_dtype=jnp.float32,
                      tn_max=256, tk_max=512):
    """One-time parameter prep (do this at module init, not per forward).

    weight: (d_model, F) nn.Linear layout; bias: (d_model,)
    Returns (w_t_padded (F_pad, D_pad), b_padded (1, D_pad), meta).
    """
    D, F = weight.shape
    tn = min(tn_max, _round_up(D, 128))
    tk = min(tk_max, _round_up(F, 128))
    d_pad = _round_up(D, tn)
    f_pad = _round_up(F, tk)
    w_t = jnp.zeros((f_pad, d_pad), compute_dtype)
    w_t = w_t.at[:F, :D].set(weight.T.astype(compute_dtype))
    b = jnp.zeros((1, d_pad), jnp.float32).at[0, :D].set(bias.astype(jnp.float32))
    meta = (D, F, d_pad, f_pad, tn, tk)
    return w_t, b, meta


@functools.partial(jax.jit, static_argnames=("meta", "tm_max"))
def flexible_input_layer_apply(x, w_t, b, meta, tm_max=256):
    """Forward of FlexibleInputLayer (len(input_shape) == 2 branch).

    x: (B, H, W);  w_t/b/meta from prepare_fc_params;  returns (B, d_model) f32.
    """
    D, F, d_pad, f_pad, tn, tk = meta
    B = x.shape[0]
    x_flat = x.reshape(B, -1).astype(w_t.dtype)          # matches x.view(B, -1)
    assert x_flat.shape[1] == F, "input does not match prepared weight"

    tm = min(tm_max, _round_up(B, 8))
    m_pad = _round_up(B, tm)
    if (m_pad, f_pad) != (B, F):
        x_flat = jnp.pad(x_flat, ((0, m_pad - B), (0, f_pad - F)))

    grid = (m_pad // tm, d_pad // tn, f_pad // tk)
    itemsize = x_flat.dtype.itemsize
    cost = pl.CostEstimate(
        flops=2 * m_pad * f_pad * d_pad,
        transcendentals=0,
        bytes_accessed=(m_pad * f_pad * itemsize          # x
                        + f_pad * d_pad * itemsize        # W^T
                        + d_pad * 4                       # bias
                        + m_pad * d_pad * 4),             # out
    )

    out = pl.pallas_call(
        _fc_bias_relu_kernel,
        out_shape=jax.ShapeDtypeStruct((m_pad, d_pad), jnp.float32),
        grid_spec=pltpu.PrefetchScalarGridSpec(
            num_scalar_prefetch=0,
            grid=grid,
            in_specs=[
                pl.BlockSpec((tm, tk), lambda i, j, k: (i, k)),   # x tile
                pl.BlockSpec((tk, tn), lambda i, j, k: (k, j)),   # W^T tile
                pl.BlockSpec((1, tn), lambda i, j, k: (0, j)),    # bias tile
            ],
            out_specs=pl.BlockSpec((tm, tn), lambda i, j, k: (i, j)),
            scratch_shapes=[pltpu.VMEM((tm, tn), jnp.float32)],
        ),
        compiler_params=pltpu.CompilerParams(
            dimension_semantics=("parallel", "parallel", "arbitrary"),
        ),
        cost_estimate=cost,
    )(x_flat, w_t, b)

    return out[:B, :D]


if __name__ == "__main__":
    # Module config: input_shape = (16, 16)  (len == 2 -> Linear path), d_model = 32
    H, W = 16, 16
    d_model = 32
    batch = 2

    key = jax.random.PRNGKey(0)
    kx, kw, kb = jax.random.split(key, 3)

    x = jax.random.normal(kx, (batch, H, W), dtype=jnp.float32)
    # Deterministic synthetic parameters (shapes match nn.Linear(H*W, d_model))
    fan_in = H * W
    bound = 1.0 / (fan_in ** 0.5)
    weight = jax.random.uniform(kw, (d_model, fan_in), jnp.float32, -bound, bound)
    bias = jax.random.uniform(kb, (d_model,), jnp.float32, -bound, bound)

    # One-time prep (transpose + pad to lane-dense layout) — done at "init" time.
    w_t, b_pad, meta = prepare_fc_params(weight, bias, compute_dtype=jnp.float32)

    out = flexible_input_layer_apply(x, w_t, b_pad, meta)
    out = jax.block_until_ready(out)

    # Reference check in plain JAX
    ref = jnp.maximum(x.reshape(batch, -1) @ weight.T + bias, 0.0)
    assert out.shape == (batch, d_model)
    assert jnp.allclose(out, ref, atol=1e-5, rtol=1e-5)

    print("KERNEL_OK")
</pallas_src>

<mosaic_0001>
module attributes {stable_mosaic.version = 11 : i64} {
  func.func @_fc_bias_relu_kernel(%arg0: i32, %arg1: i32, %arg2: i32, %arg3: memref<8x256xf32, #tpu.memory_space<vmem>>, %arg4: memref<256x128xf32, #tpu.memory_space<vmem>>, %arg5: memref<1x128xf32, #tpu.memory_space<vmem>>, %arg6: memref<8x128xf32, #tpu.memory_space<vmem>>, %arg7: memref<8x128xf32, #tpu.memory_space<vmem>>) attributes {dimension_semantics = [#tpu.dimension_semantics<parallel>, #tpu.dimension_semantics<parallel>, #tpu.dimension_semantics<arbitrary>], iteration_bounds = array<i64: 1, 1, 1>, scalar_prefetch = 0 : i64, scratch_operands = 1 : i64, tpu.core_type = #tpu.core_type<tc>, window_params = [{transform_indices = @transform_0, window_bounds = array<i64: 8, 256>}, {transform_indices = @transform_1, window_bounds = array<i64: 256, 128>}, {transform_indices = @transform_2, window_bounds = array<i64: 1, 128>}, {transform_indices = @transform_3, window_bounds = array<i64: 8, 128>}]} {
    %c0_i32 = arith.constant 0 : i32
    %0 = arith.cmpi eq, %arg2, %c0_i32 : i32
    %1 = arith.extui %0 : i1 to i32
    %c0_i32_0 = arith.constant 0 : i32
    %2 = arith.cmpi ne, %1, %c0_i32_0 : i32
    scf.if %2 {
      %cst_10 = arith.constant 0.000000e+00 : f32
      %12 = vector.broadcast %cst_10 : f32 to vector<8x128xf32>
      %c0_11 = arith.constant 0 : index
      %c0_12 = arith.constant 0 : index
      %13 = vector.load %arg7[%c0_11, %c0_12] : memref<8x128xf32, #tpu.memory_space<vmem>>, vector<8x128xf32>
      tpu.vector_store %arg7[%c0_11, %c0_12], %12 {strides = array<i32>} : memref<8x128xf32, #tpu.memory_space<vmem>>, vector<8x128xf32>,
    } else {
    }
    %c0 = arith.constant 0 : index
    %c0_1 = arith.constant 0 : index
    %3 = vector.load %arg7[%c0, %c0_1] : memref<8x128xf32, #tpu.memory_space<vmem>>, vector<8x128xf32>
    %c0_2 = arith.constant 0 : index
    %c0_3 = arith.constant 0 : index
    %4 = vector.load %arg3[%c0_2, %c0_3] : memref<8x256xf32, #tpu.memory_space<vmem>>, vector<8x256xf32>
    %c0_4 = arith.constant 0 : index
    %c0_5 = arith.constant 0 : index
    %5 = vector.load %arg4[%c0_4, %c0_5] : memref<256x128xf32, #tpu.memory_space<vmem>>, vector<256x128xf32>
    %cst = arith.constant dense<0.000000e+00> : vector<8x128xf32>
    %6 = tpu.matmul %4, %5, %cst {dimension_numbers = #tpu.dot_dimension_numbers<[1], [0], [0], [1], [0, 0, 1, 1], [], []>} : vector<8x256xf32>, vector<256x128xf32>, vector<8x128xf32> -> vector<8x128xf32>
    %7 = arith.addf %3, %6 : vector<8x128xf32>
    %c0_6 = arith.constant 0 : index
    %c0_7 = arith.constant 0 : index
    %8 = vector.load %arg7[%c0_6, %c0_7] : memref<8x128xf32, #tpu.memory_space<vmem>>, vector<8x128xf32>
    tpu.vector_store %arg7[%c0_6, %c0_7], %7 {strides = array<i32>} : memref<8x128xf32, #tpu.memory_space<vmem>>, vector<8x128xf32>,
    %c0_i32_8 = arith.constant 0 : i32
    %9 = arith.cmpi eq, %arg2, %c0_i32_8 : i32
    %10 = arith.extui %9 : i1 to i32
    %c0_i32_9 = arith.constant 0 : i32
    %11 = arith.cmpi ne, %10, %c0_i32_9 : i32
    scf.if %11 {
      %c0_10 = arith.constant 0 : index
      %c0_11 = arith.constant 0 : index
      %12 = vector.load %arg7[%c0_10, %c0_11] : memref<8x128xf32, #tpu.memory_space<vmem>>, vector<8x128xf32>
      %c0_12 = arith.constant 0 : index
      %c0_13 = arith.constant 0 : index
      %13 = vector.load %arg5[%c0_12, %c0_13] : memref<1x128xf32, #tpu.memory_space<vmem>>, vector<1x128xf32>
      %14 = vector.broadcast %13 : vector<1x128xf32> to vector<8x128xf32>
      %15 = arith.addf %12, %14 : vector<8x128xf32>
      %cst_14 = arith.constant 0.000000e+00 : f32
      %16 = vector.broadcast %cst_14 : f32 to vector<8x128xf32>
      %17 = arith.maximumf %15, %16 : vector<8x128xf32>
      %c0_15 = arith.constant 0 : index
      %c0_16 = arith.constant 0 : index
      %18 = vector.load %arg6[%c0_15, %c0_16] : memref<8x128xf32, #tpu.memory_space<vmem>>, vector<8x128xf32>
      tpu.vector_store %arg6[%c0_15, %c0_16], %17 {strides = array<i32>} : memref<8x128xf32, #tpu.memory_space<vmem>>, vector<8x128xf32>,
    } else {
    }
    return
  }
  func.func @transform_0(%arg0: i32, %arg1: i32, %arg2: i32) -> (i32, i32) {
    %c0_i32 = arith.constant 0 : i32
    return %arg0, %arg2 : i32, i32
  }
  func.func @transform_1(%arg0: i32, %arg1: i32, %arg2: i32) -> (i32, i32) {
    %c0_i32 = arith.constant 0 : i32
    return %arg2, %arg1 : i32, i32
  }
  func.func @transform_2(%arg0: i32, %arg1: i32, %arg2: i32) -> (i32, i32) {
    %c0_i32 = arith.constant 0 : i32
    %c0_i32_0 = arith.constant 0 : i32
    return %c0_i32, %arg1 : i32, i32
  }
  func.func @transform_3(%arg0: i32, %arg1: i32, %arg2: i32) -> (i32, i32) {
    %c0_i32 = arith.constant 0 : i32
    return %arg0, %arg1 : i32, i32
  }
}

</mosaic_0001>

<bundles_post_ra>
// kernel: flexible_input_layer_apply.1
= control target key start
LH: loop header
LB: loop body
LE: loop exit
PB: predicated region body
PF: predicated region fallthrough
CT: control target
= control target key end

     0   :  { %8 = vsyncpa [#allocation4], 0  ;;  %s220_s12 = smov [#allocation3]   ;;  %s258_s0 = inlined_call_operand.vmem [shape: f32[8,256], index: 0, kind: input, shape index: {}]   ;;  %s259_s1 = inlined_call_operand.hbm [shape: f32[256,128], index: 1, kind: input, shape index: {}]   ;;  %s260_s2 = inlined_call_operand.vmem [shape: f32[1,128], index: 2, kind: input, shape index: {}]   ;;  %s261_s3 = inlined_call_operand.vmem [shape: f32[8,128], index: 3, kind: output, shape index: {}]  }
   0x1   :  { %s16_s13 = sshll.u32 %s220_s12, 4  ;;  %s17_s13 = int_to_ptr.vmem [resolvable:$true] %s16_s13 }
   0x2   :  { %s206_s14 = scalar_lea.vmem %s17_s13, 4096  ;;  %p211_p1 = scmp.lt.s32.totalorder %s17_s13, %s17_s13 }
   0x3   :  { %p207_p0 = scmp.ne.s32.totalorder %s17_s13, %s206_s14  ;;  %p212_p2 = scmp.lt.s32.totalorder %s206_s14, %s206_s14 }
   0x5   :  { %p213_p3 = por %p212_p2, %p211_p1 }
   0x7   :  { %p214_p4 = pnand %p213_p3, %p207_p0 }
   0x9   :  { %217 = shalt.err (!%p214_p4)
}
   0xa   :  { %s221_s15 = smov 128   ;;  %s222_s16 = smov 8  }
   0xb   :  { %22 = dma.hbm_to_vmem [thread:$0]  %s259_s1, 4096, %s17_s13, [#allocation4], %s221_s15, %s221_s15, %s222_s16  }
   0xc   :  { %218 = dma.done.wait [#allocation4], 4096  }
   0xd   :  { %219 = vsyncadd [#allocation4], 4294963200  ;;  %v67_v0 = vld [vmem:[#allocation3 + $0xf8] sm:$0xff]  ;;  %v66_v2 = vld [vmem:[#allocation3 + $0xf0] sm:$0xff] }
   0xe   :  { %v51_v1 = vld [vmem:[#allocation3 + $0x78] sm:$0xff]  ;;  %160 = vmatprep.subr.mxu0 %v67_v0  ;;  %v50_v3 = vld [vmem:[#allocation3 + $0x70] sm:$0xff]  ;;  %v65_v4 = vld [vmem:[#allocation3 + $0xe8] sm:$0xff] }
   0xf   :  { %161 = vmatpush3.msra.mxu0 %v51_v1  ;;  %v49_v5 = vld [vmem:[#allocation3 + $0x68] sm:$0xff]  ;;  %v64_v6 = vld [vmem:[#allocation3 + $0xe0] sm:$0xff]  ;;  %v63_v8 = vld [vmem:[#allocation3 + $0xd8] sm:$0xff] }
  0x10   :  { %162 = vmatprep.subr.mxu0 %v66_v2  ;;  %v48_v7 = vld [vmem:[#allocation3 + $0x60] sm:$0xff]  ;;  %v47_v9 = vld [vmem:[#allocation3 + $0x58] sm:$0xff]  ;;  %v62_v10 = vld [vmem:[#allocation3 + $0xd0] sm:$0xff] }
  0x11   :  { %163 = vmatpush3.msra.mxu0 %v50_v3  ;;  %v46_v11 = vld [vmem:[#allocation3 + $0x50] sm:$0xff]  ;;  %v61_v12 = vld [vmem:[#allocation3 + $0xc8] sm:$0xff]  ;;  %v60_v15 = vld [vmem:[#allocation3 + $0xc0] sm:$0xff] }
  0x12   :  { %164 = vmatprep.subr.mxu0 %v65_v4  ;;  %v35_v13 = vld [vmem:[%s258_s0 + $0x8] sm:$0xff]  ;;  %v44_v16 = vld [vmem:[#allocation3 + $0x40] sm:$0xff]  ;;  %v59_v17 = vld [vmem:[#allocation3 + $0xb8] sm:$0xff] }
  0x13   :  { %165 = vmatpush3.msra.mxu0 %v49_v5  ;;  %v45_v14 = vld [vmem:[#allocation3 + $0x48] sm:$0xff]  ;;  %132 = vmatprep.mubr.f32.mxu0 %v35_v13  ;;  %v43_v18 = vld [vmem:[#allocation3 + $0x38] sm:$0xff]  ;;  %v58_v19 = vld [vmem:[#allocation3 + $0xb0] sm:$0xff] }
  0x14   :  { %166 = vmatprep.subr.mxu0 %v64_v6  ;;  %v42_v20 = vld [vmem:[#allocation3 + $0x30] sm:$0xff]  ;;  %v57_v21 = vld [vmem:[#allocation3 + $0xa8] sm:$0xff]  ;;  %v56_v23 = vld [vmem:[#allocation3 + $0xa0] sm:$0xff] }
  0x15   :  { %167 = vmatpush3.msra.mxu0 %v48_v7  ;;  %v41_v22 = vld [vmem:[#allocation3 + $0x28] sm:$0xff]  ;;  %v40_v24 = vld [vmem:[#allocation3 + $0x20] sm:$0xff]  ;;  %v55_v25 = vld [vmem:[#allocation3 + $0x98] sm:$0xff] }
  0x16   :  { %168 = vmatprep.subr.mxu0 %v63_v8  ;;  %v39_v26 = vld [vmem:[#allocation3 + $0x18] sm:$0xff]  ;;  %v54_v27 = vld [vmem:[#allocation3 + $0x90] sm:$0xff]  ;;  %v53_v29 = vld [vmem:[#allocation3 + $0x88] sm:$0xff] }
  0x17   :  { %169 = vmatpush3.msra.mxu0 %v47_v9  ;;  %v38_v28 = vld [vmem:[#allocation3 + $0x10] sm:$0xff]  ;;  %v37_v30 = vld [vmem:[#allocation3 + $0x8] sm:$0xff]  ;;  %v52_v31 = vld [vmem:[#allocation3 + $0x80] sm:$0xff] }
  0x18   :  { %170 = vmatprep.subr.mxu0 %v62_v10  ;;  %v36_v32 = vld [vmem:[#allocation3] sm:$0xff] }
  0x19   :  { %171 = vmatpush3.msra.mxu0 %v46_v11  ;;  %v34_v33 = vld [vmem:[%s258_s0] sm:$0xff] }
  0x1a   :  { %172 = vmatprep.subr.mxu0 %v61_v12  ;;  %v159_v36 = vld [vmem:[%s260_s2] ss:$0 sm:$0xff] }
  0x1b   :  { %173 = vmatpush3.msra.mxu0 %v45_v14 }
  0x1c   :  { %174 = vmatprep.subr.mxu0 %v60_v15 }
  0x1d   :  { %175 = vmatpush3.msra.mxu0 %v44_v16 }
  0x1e   :  { %176 = vmatprep.subr.mxu0 %v59_v17 }
  0x1f   :  { %177 = vmatpush3.msra.mxu0 %v43_v18 }
  0x20   :  { %178 = vmatprep.subr.mxu0 %v58_v19 }
  0x21   :  { %179 = vmatpush3.msra.mxu0 %v42_v20 }
  0x22   :  { %180 = vmatprep.subr.mxu0 %v57_v21 }
  0x23   :  { %181 = vmatpush3.msra.mxu0 %v41_v22 }
  0x24   :  { %182 = vmatprep.subr.mxu0 %v56_v23 }
  0x25   :  { %183 = vmatpush3.msra.mxu0 %v40_v24 }
  0x26   :  { %184 = vmatprep.subr.mxu0 %v55_v25 }
  0x27   :  { %185 = vmatpush3.msra.mxu0 %v39_v26 }
  0x28   :  { %186 = vmatprep.subr.mxu0 %v54_v27 }
  0x29   :  { %187 = vmatpush3.msra.mxu0 %v38_v28 }
  0x2a   :  { %188 = vmatprep.subr.mxu0 %v53_v29 }
  0x2b   :  { %189 = vmatpush3.msra.mxu0 %v37_v30 }
  0x2c   :  { %190 = vmatprep.subr.mxu0 %v52_v31 }
  0x2d   :  { %191 = vmatpush3.msra.mxu0 %v36_v32 }
  0x2e   :  { %133 = vmatmul.mubr.f32.vlgmr.msra.gmra.mxu0 %v34_v33 }
  0xee   :  { %v192_v34 = vpop.f32.mrf.mxu0 }
  0xf0   :  { %v193_v35 = vpop.f32.mrf.mxu0 }
  0xf1   :  { %v194_v37 = vadd.f32 %v193_v35, %v192_v34 }
  0xf3   :  { %v151_v38 = vadd.f32 %v194_v37, %v159_v36 }
  0xf5   :  { %v152_v39 = vmax.f32 %v151_v38, 0.0 }
  0xf7   :  { %153 = vst [vmem:[%s261_s3] sm:$0xff] %v152_v39 }
  0xf8   :  { %158 = vsyncpa [#allocation4], 1 }

</bundles_post_ra>
